<compile_context>
chip_gen: v7x
topology: tpu7x:2x2x1
jax: 0.10.0
libtpu: 0.0.40
codegen_flags: <defaults>
</compile_context>

<pallas_src>
import functools

import jax
import jax.numpy as jnp
from jax.experimental import pallas as pl
from jax.experimental.pallas import tpu as pltpu


def _round_up(x, m):
    return (x + m - 1) // m * m


# --------------------------------------------------------------------------
# Pallas kernels
# --------------------------------------------------------------------------

def _mm_affine_kernel(x_ref, w_ref, s_ref, b_ref, o_ref, acc_ref, *, relu):
    """out = maybe_relu((x @ w) * scale + bias), accumulated over the k axis."""
    k = pl.program_id(2)

    @pl.when(k == 0)
    def _():
        acc_ref[...] = jnp.zeros_like(acc_ref)

    acc_ref[...] += jnp.dot(x_ref[...], w_ref[...],
                            preferred_element_type=jnp.float32)

    @pl.when(k == pl.num_programs(2) - 1)
    def _():
        y = acc_ref[...] * s_ref[...] + b_ref[...]
        if relu:
            y = jnp.maximum(y, 0.0)
        o_ref[...] = y.astype(o_ref.dtype)


def _mm_affine_res_kernel(x_ref, w_ref, s_ref, b_ref, r_ref, o_ref, acc_ref):
    """Same matmul, epilogue fuses the residual join: relu(acc*s + b + res)."""
    k = pl.program_id(2)

    @pl.when(k == 0)
    def _():
        acc_ref[...] = jnp.zeros_like(acc_ref)

    acc_ref[...] += jnp.dot(x_ref[...], w_ref[...],
                            preferred_element_type=jnp.float32)

    @pl.when(k == pl.num_programs(2) - 1)
    def _():
        y = acc_ref[...] * s_ref[...] + b_ref[...] + r_ref[...].astype(jnp.float32)
        o_ref[...] = jnp.maximum(y, 0.0).astype(o_ref.dtype)


def matmul_affine(x, w, scale, bias, *, relu, residual=None,
                  out_dtype=jnp.bfloat16):
    """y = epilogue((x @ w) * scale + bias)  [+ residual, then ReLU].

    x:       (M, Kp)   bf16 (K already padded to the weight's Kp)
    w:       (Kp, Np)  bf16, pre-padded at init
    scale/b: (1, Np)   f32, BN folded at init
    residual:(M, Np)   optional, fused as relu(y + residual)
    Returns (M, Np).
    """
    M, Kp = x.shape
    Np = w.shape[1]

    tm = min(_round_up(M, 16), 256)      # adaptive: no 128-pad of tiny M
    Mp = _round_up(M, tm)
    tn = min(Np, 256)                    # 256-wide for v6e/v7x MXU
    tk = Kp if Kp <= 4608 else 512       # single K step for every conv here
    assert Kp % tk == 0 and Np % tn == 0

    if Mp != M:
        x = jnp.pad(x, ((0, Mp - M), (0, 0)))

    in_specs = [
        pl.BlockSpec((tm, tk), lambda i, j, k: (i, k)),
        pl.BlockSpec((tk, tn), lambda i, j, k: (k, j)),
        pl.BlockSpec((1, tn), lambda i, j, k: (0, j)),
        pl.BlockSpec((1, tn), lambda i, j, k: (0, j)),
    ]
    args = [x, w, scale, bias]

    if residual is None:
        kernel = functools.partial(_mm_affine_kernel, relu=relu)
    else:
        r = residual.astype(jnp.bfloat16)
        if Mp != M:
            r = jnp.pad(r, ((0, Mp - M), (0, 0)))
        in_specs.append(pl.BlockSpec((tm, tn), lambda i, j, k: (i, j)))
        args.append(r)
        kernel = _mm_affine_res_kernel

    out = pl.pallas_call(
        kernel,
        out_shape=jax.ShapeDtypeStruct((Mp, Np), out_dtype),
        grid=(Mp // tm, Np // tn, Kp // tk),
        in_specs=in_specs,
        out_specs=pl.BlockSpec((tm, tn), lambda i, j, k: (i, j)),
        scratch_shapes=[pltpu.VMEM((tm, tn), jnp.float32)],
        compiler_params=pltpu.CompilerParams(
            dimension_semantics=("parallel", "parallel", "arbitrary")),
    )(*args)
    return out[:M]


def _max9_kernel(p_ref, o_ref):
    o_ref[...] = jnp.max(p_ref[...], axis=0).astype(o_ref.dtype)


def maxpool_3x3_s2_p1(x):
    """MaxPool2d(kernel=3, stride=2, padding=1) on NHWC input (bf16)."""
    N, H, W, C = x.shape
    Ho = (H + 2 - 3) // 2 + 1
    Wo = (W + 2 - 3) // 2 + 1
    neg = jnp.finfo(x.dtype).min
    xp = jnp.pad(x, ((0, 0), (1, 1), (1, 1), (0, 0)), constant_values=neg)
    patches = [xp[:, i:i + 2 * Ho:2, j:j + 2 * Wo:2, :].reshape(N * Ho * Wo, C)
               for i in range(3) for j in range(3)]
    p = jnp.stack(patches, axis=0)                       # (9, M, C)
    M = N * Ho * Wo

    # Lane-dense view: fold rows into the 128-wide lane axis when C < 128.
    rows, lanes = M, C
    if C < 128 and (M * C) % 128 == 0:
        rows, lanes = M * C // 128, 128
        p = p.reshape(9, rows, lanes)

    tm = min(_round_up(rows, 16), 512)
    rp = _round_up(rows, tm)
    if rp != rows:
        p = jnp.pad(p, ((0, 0), (0, rp - rows), (0, 0)), constant_values=neg)

    out = pl.pallas_call(
        _max9_kernel,
        out_shape=jax.ShapeDtypeStruct((rp, lanes), x.dtype),
        grid=(rp // tm,),
        in_specs=[pl.BlockSpec((9, tm, lanes), lambda i: (0, i, 0))],
        out_specs=pl.BlockSpec((tm, lanes), lambda i: (i, 0)),
        compiler_params=pltpu.CompilerParams(dimension_semantics=("parallel",)),
    )(p)
    return out[:rows].reshape(N, Ho, Wo, C)


def _gap_fc_kernel(x_ref, w_ref, b_ref, o_ref):
    # x: (N, H*W, C) bf16; w: (1, C) f32; b: (1, 1) f32; out: (N, 1) f32.
    feat = jnp.mean(x_ref[...].astype(jnp.float32), axis=1)        # (N, C)
    w = w_ref[...].astype(jnp.float32)                             # (1, C)
    o_ref[...] = jnp.sum(feat * w, axis=-1, keepdims=True) + b_ref[...]


def gap_fc(x, fc_w, fc_b):
    """AdaptiveAvgPool2d((1,1)) + Linear(512, 1), fused into one tiny kernel."""
    N, H, W, C = x.shape
    xr = x.reshape(N, H * W, C)
    w = fc_w.reshape(1, C).astype(jnp.float32)
    b = fc_b.reshape(1, 1).astype(jnp.float32)
    return pl.pallas_call(
        _gap_fc_kernel,
        out_shape=jax.ShapeDtypeStruct((N, 1), jnp.float32),
        grid=(1,),
        in_specs=[pl.BlockSpec((N, H * W, C), lambda i: (0, 0, 0)),
                  pl.BlockSpec((1, C), lambda i: (0, 0)),
                  pl.BlockSpec((1, 1), lambda i: (0, 0))],
        out_specs=pl.BlockSpec((N, 1), lambda i: (0, 0)),
    )(xr, w, b)


# --------------------------------------------------------------------------
# Conv + BN glue (im2col in plain JAX, matmul in Pallas)
# --------------------------------------------------------------------------

def _im2col(x, kh, kw, stride, pad):
    # TODO(synk): replace im2col with a direct tap-accumulating conv kernel
    # (element-offset BlockSpecs / manual strided DMA) to avoid the kh*kw
    # activation blow-up in HBM; bf16 halves it today but doesn't remove it.
    N, H, W, C = x.shape
    Ho = (H + 2 * pad - kh) // stride + 1
    Wo = (W + 2 * pad - kw) // stride + 1
    if kh == 1 and kw == 1 and pad == 0:
        return x[:, ::stride, ::stride, :].reshape(N * Ho * Wo, C), Ho, Wo
    xp = jnp.pad(x, ((0, 0), (pad, pad), (pad, pad), (0, 0)))
    cols = []
    for i in range(kh):
        for j in range(kw):
            cols.append(xp[:, i:i + stride * Ho:stride,
                           j:j + stride * Wo:stride, :])
    patches = jnp.concatenate(cols, axis=-1)             # (N, Ho, Wo, kh*kw*C)
    return patches.reshape(N * Ho * Wo, kh * kw * C), Ho, Wo


def conv_bn(x, cp, *, relu, residual=None):
    """Conv2d (no bias) + folded BN (+ ReLU / + fused residual ReLU).

    cp is a prepared-parameter dict from _prep_conv (bf16 weights already
    transposed to (Kp, Cout) and K-padded; BN folded into scale/bias).
    """
    patches, Ho, Wo = _im2col(x, cp['kh'], cp['kw'], cp['stride'], cp['pad'])
    Kp = cp['w'].shape[0]
    if Kp != patches.shape[1]:
        patches = jnp.pad(patches, ((0, 0), (0, Kp - patches.shape[1])))
    patches = patches.astype(jnp.bfloat16)

    res2d = None
    if residual is not None:
        rn, rh, rw, rc = residual.shape
        res2d = residual.reshape(rn * rh * rw, rc)

    y = matmul_affine(patches, cp['w'], cp['scale'], cp['bias'],
                      relu=relu, residual=res2d)
    return y.reshape(x.shape[0], Ho, Wo, cp['cout'])


def basic_block(x, bp):
    out = conv_bn(x, bp['conv1'], relu=True)
    if 'down' in bp:
        identity = conv_bn(x, bp['down'], relu=False)
    else:
        identity = x
    # Residual add + ReLU fused into conv2's matmul epilogue.
    return conv_bn(out, bp['conv2'], relu=False, residual=identity)


# --------------------------------------------------------------------------
# Parameters: deterministic init (ResNet18 shapes, fc: 512 -> 1) + one-time
# prep (BN fold, weight transpose/pad, bf16 cast) hoisted out of the forward.
# --------------------------------------------------------------------------

def _conv_w(key, cout, cin, kh, kw):
    fan_in = cin * kh * kw
    std = (2.0 / fan_in) ** 0.5
    return jax.random.normal(key, (cout, cin, kh, kw), jnp.float32) * std


def _bn(c):
    return dict(gamma=jnp.ones((c,), jnp.float32),
                beta=jnp.zeros((c,), jnp.float32),
                mean=jnp.zeros((c,), jnp.float32),
                var=jnp.ones((c,), jnp.float32))


def init_params(key):
    keys = iter(jax.random.split(key, 64))
    p = {}
    p['conv1_w'] = _conv_w(next(keys), 64, 3, 7, 7)
    p['bn1'] = _bn(64)
    layer_cfg = [(64, 64, 1), (64, 128, 2), (128, 256, 2), (256, 512, 2)]
    p['layers'] = []
    for cin, cout, stride in layer_cfg:
        blocks = []
        b0 = dict(conv1_w=_conv_w(next(keys), cout, cin, 3, 3), bn1=_bn(cout),
                  conv2_w=_conv_w(next(keys), cout, cout, 3, 3), bn2=_bn(cout))
        if stride != 1 or cin != cout:
            b0['down_w'] = _conv_w(next(keys), cout, cin, 1, 1)
            b0['down_bn'] = _bn(cout)
        blocks.append((b0, stride))
        b1 = dict(conv1_w=_conv_w(next(keys), cout, cout, 3, 3), bn1=_bn(cout),
                  conv2_w=_conv_w(next(keys), cout, cout, 3, 3), bn2=_bn(cout))
        blocks.append((b1, 1))
        p['layers'].append(blocks)
    bound = 1.0 / (512 ** 0.5)
    p['fc_w'] = jax.random.uniform(next(keys), (1, 512), jnp.float32, -bound, bound)
    p['fc_b'] = jax.random.uniform(next(keys), (1,), jnp.float32, -bound, bound)
    return p


def _prep_conv(w_oihw, bn, stride, pad):
    cout, cin, kh, kw = w_oihw.shape
    K = kh * kw * cin
    Kp = _round_up(K, 16)                              # bf16 sublane multiple
    w2 = jnp.transpose(w_oihw, (2, 3, 1, 0)).reshape(K, cout)
    if Kp != K:
        w2 = jnp.pad(w2, ((0, Kp - K), (0, 0)))
    eps = 1e-5
    scale = bn['gamma'] / jnp.sqrt(bn['var'] + eps)
    bias = bn['beta'] - bn['mean'] * scale
    return dict(w=w2.astype(jnp.bfloat16),
                scale=scale.reshape(1, cout).astype(jnp.float32),
                bias=bias.reshape(1, cout).astype(jnp.float32),
                kh=kh, kw=kw, stride=stride, pad=pad, cout=cout)


def prepare_params(p):
    q = {'conv1': _prep_conv(p['conv1_w'], p['bn1'], stride=2, pad=3),
         'layers': [], 'fc_w': p['fc_w'], 'fc_b': p['fc_b']}
    for blocks in p['layers']:
        qblocks = []
        for bp, stride in blocks:
            qb = dict(conv1=_prep_conv(bp['conv1_w'], bp['bn1'], stride, 1),
                      conv2=_prep_conv(bp['conv2_w'], bp['bn2'], 1, 1))
            if 'down_w' in bp:
                qb['down'] = _prep_conv(bp['down_w'], bp['down_bn'], stride, 0)
            qblocks.append(qb)
        q['layers'].append(qblocks)
    return q


# --------------------------------------------------------------------------
# Forward pass (ResNetSteeringModel.forward)
# --------------------------------------------------------------------------

def resnet_steering_forward(params, x_nchw):
    # `.to(device)` in the PyTorch module is a no-op here (single device).
    x = jnp.transpose(x_nchw, (0, 2, 3, 1)).astype(jnp.bfloat16)   # NCHW -> NHWC
    x = conv_bn(x, params['conv1'], relu=True)
    x = maxpool_3x3_s2_p1(x)
    for blocks in params['layers']:
        for bp in blocks:
            x = basic_block(x, bp)
    return gap_fc(x, params['fc_w'], params['fc_b'])               # (N, 1) f32


if __name__ == "__main__":
    key = jax.random.PRNGKey(0)
    pkey, xkey = jax.random.split(key)
    params = prepare_params(init_params(pkey))
    # Small ImageNet-style input: batch=2, 3 channels, 64x64 spatial (NCHW).
    x = jax.random.normal(xkey, (2, 3, 64, 64), jnp.float32)
    out = resnet_steering_forward(params, x)
    out = jax.block_until_ready(out)
    assert out.shape == (2, 1) and out.dtype == jnp.float32
    assert bool(jnp.all(jnp.isfinite(out)))
    print("KERNEL_OK")
</pallas_src>

<mosaic_0001>
module attributes {stable_mosaic.version = 11 : i64} {
  func.func @_mm_affine_kernel(%arg0: i32, %arg1: i32, %arg2: i32, %arg3: memref<256x160xbf16, #tpu.memory_space<vmem>>, %arg4: memref<160x64xbf16, #tpu.memory_space<vmem>>, %arg5: memref<1x64xf32, #tpu.memory_space<vmem>>, %arg6: memref<1x64xf32, #tpu.memory_space<vmem>>, %arg7: memref<256x64xbf16, #tpu.memory_space<vmem>>, %arg8: memref<256x64xf32, #tpu.memory_space<vmem>>) attributes {dimension_semantics = [#tpu.dimension_semantics<parallel>, #tpu.dimension_semantics<parallel>, #tpu.dimension_semantics<arbitrary>], iteration_bounds = array<i64: 8, 1, 1>, scalar_prefetch = 0 : i64, scratch_operands = 1 : i64, tpu.core_type = #tpu.core_type<tc>, window_params = [{transform_indices = @transform_0, window_bounds = array<i64: 256, 160>}, {transform_indices = @transform_1, window_bounds = array<i64: 160, 64>}, {transform_indices = @transform_2, window_bounds = array<i64: 1, 64>}, {transform_indices = @transform_3, window_bounds = array<i64: 1, 64>}, {transform_indices = @transform_4, window_bounds = array<i64: 256, 64>}]} {
    %c0_i32 = arith.constant 0 : i32
    %0 = arith.cmpi eq, %arg2, %c0_i32 : i32
    %1 = arith.extui %0 : i1 to i32
    %c0_i32_0 = arith.constant 0 : i32
    %2 = arith.cmpi ne, %1, %c0_i32_0 : i32
    scf.if %2 {
      %cst_10 = arith.constant 0.000000e+00 : f32
      %12 = vector.broadcast %cst_10 : f32 to vector<256x64xf32>
      %c0_11 = arith.constant 0 : index
      %c0_12 = arith.constant 0 : index
      %13 = vector.load %arg8[%c0_11, %c0_12] : memref<256x64xf32, #tpu.memory_space<vmem>>, vector<256x64xf32>
      tpu.vector_store %arg8[%c0_11, %c0_12], %12 {strides = array<i32>} : memref<256x64xf32, #tpu.memory_space<vmem>>, vector<256x64xf32>,
    } else {
    }
    %c0 = arith.constant 0 : index
    %c0_1 = arith.constant 0 : index
    %3 = vector.load %arg8[%c0, %c0_1] : memref<256x64xf32, #tpu.memory_space<vmem>>, vector<256x64xf32>
    %c0_2 = arith.constant 0 : index
    %c0_3 = arith.constant 0 : index
    %4 = vector.load %arg3[%c0_2, %c0_3] : memref<256x160xbf16, #tpu.memory_space<vmem>>, vector<256x160xbf16>
    %c0_4 = arith.constant 0 : index
    %c0_5 = arith.constant 0 : index
    %5 = vector.load %arg4[%c0_4, %c0_5] : memref<160x64xbf16, #tpu.memory_space<vmem>>, vector<160x64xbf16>
    %cst = arith.constant dense<0.000000e+00> : vector<256x64xf32>
    %6 = tpu.matmul %4, %5, %cst {dimension_numbers = #tpu.dot_dimension_numbers<[1], [0], [0], [1], [0, 0, 1, 1], [], []>} : vector<256x160xbf16>, vector<160x64xbf16>, vector<256x64xf32> -> vector<256x64xf32>
    %7 = arith.addf %3, %6 : vector<256x64xf32>
    %c0_6 = arith.constant 0 : index
    %c0_7 = arith.constant 0 : index
    %8 = vector.load %arg8[%c0_6, %c0_7] : memref<256x64xf32, #tpu.memory_space<vmem>>, vector<256x64xf32>
    tpu.vector_store %arg8[%c0_6, %c0_7], %7 {strides = array<i32>} : memref<256x64xf32, #tpu.memory_space<vmem>>, vector<256x64xf32>,
    %c0_i32_8 = arith.constant 0 : i32
    %9 = arith.cmpi eq, %arg2, %c0_i32_8 : i32
    %10 = arith.extui %9 : i1 to i32
    %c0_i32_9 = arith.constant 0 : i32
    %11 = arith.cmpi ne, %10, %c0_i32_9 : i32
    scf.if %11 {
      %c0_10 = arith.constant 0 : index
      %c0_11 = arith.constant 0 : index
      %12 = vector.load %arg8[%c0_10, %c0_11] : memref<256x64xf32, #tpu.memory_space<vmem>>, vector<256x64xf32>
      %c0_12 = arith.constant 0 : index
      %c0_13 = arith.constant 0 : index
      %13 = vector.load %arg5[%c0_12, %c0_13] : memref<1x64xf32, #tpu.memory_space<vmem>>, vector<1x64xf32>
      %14 = vector.broadcast %13 : vector<1x64xf32> to vector<256x64xf32>
      %15 = arith.mulf %12, %14 : vector<256x64xf32>
      %c0_14 = arith.constant 0 : index
      %c0_15 = arith.constant 0 : index
      %16 = vector.load %arg6[%c0_14, %c0_15] : memref<1x64xf32, #tpu.memory_space<vmem>>, vector<1x64xf32>
      %17 = vector.broadcast %16 : vector<1x64xf32> to vector<256x64xf32>
      %18 = arith.addf %15, %17 : vector<256x64xf32>
      %cst_16 = arith.constant 0.000000e+00 : f32
      %19 = vector.broadcast %cst_16 : f32 to vector<256x64xf32>
      %20 = arith.maximumf %18, %19 : vector<256x64xf32>
      %21 = arith.truncf %20 : vector<256x64xf32> to vector<256x64xbf16>
      %c0_17 = arith.constant 0 : index
      %c0_18 = arith.constant 0 : index
      %22 = vector.load %arg7[%c0_17, %c0_18] : memref<256x64xbf16, #tpu.memory_space<vmem>>, vector<256x64xbf16>
      tpu.vector_store %arg7[%c0_17, %c0_18], %21 {strides = array<i32>} : memref<256x64xbf16, #tpu.memory_space<vmem>>, vector<256x64xbf16>,
    } else {
    }
    return
  }
  func.func @transform_0(%arg0: i32, %arg1: i32, %arg2: i32) -> (i32, i32) {
    %c0_i32 = arith.constant 0 : i32
    return %arg0, %arg2 : i32, i32
  }
  func.func @transform_1(%arg0: i32, %arg1: i32, %arg2: i32) -> (i32, i32) {
    %c0_i32 = arith.constant 0 : i32
    return %arg2, %arg1 : i32, i32
  }
  func.func @transform_2(%arg0: i32, %arg1: i32, %arg2: i32) -> (i32, i32) {
    %c0_i32 = arith.constant 0 : i32
    %c0_i32_0 = arith.constant 0 : i32
    return %c0_i32, %arg1 : i32, i32
  }
  func.func @transform_3(%arg0: i32, %arg1: i32, %arg2: i32) -> (i32, i32) {
    %c0_i32 = arith.constant 0 : i32
    %c0_i32_0 = arith.constant 0 : i32
    return %c0_i32, %arg1 : i32, i32
  }
  func.func @transform_4(%arg0: i32, %arg1: i32, %arg2: i32) -> (i32, i32) {
    %c0_i32 = arith.constant 0 : i32
    return %arg0, %arg1 : i32, i32
  }
}

</mosaic_0001>

<bundles_post_ra>
// kernel: tpu_custom_call.1
= control target key start
LH: loop header
LB: loop body
LE: loop exit
PB: predicated region body
PF: predicated region fallthrough
CT: control target
= control target key end

     0   :  { %s1636_s15 = smov 0   ;;  %s1638_s16 = smov 0   ;;  %s1977_s0 = inlined_call_operand.vmem [shape: bf16[2048,160], index: 0, kind: input, shape index: {}]   ;;  %s1978_s1 = inlined_call_operand.vmem [shape: bf16[160,64], index: 1, kind: input, shape index: {}]   ;;  %s1979_s2 = inlined_call_operand.vmem [shape: f32[1,64], index: 2, kind: input, shape index: {}]   ;;  %s1980_s3 = inlined_call_operand.vmem [shape: f32[1,64], index: 3, kind: input, shape index: {}]   ;;  %s1981_s4 = inlined_call_operand.vmem [shape: bf16[2048,64], index: 4, kind: output, shape index: {}]  }
   0x1   :  { %s1640_s17 = smov 0  }
   0x2 LB: > { %s33_s18 = sadd.s32 1, %s1603_s16  ;;  %p1348_p0 = scmp.ge.s32.totalorder %s1607_s17, 1  ;;  %s1607_s17 = sphi %s1640_s17, %s14_s17   ;;  %s1603_s16 = sphi %s1638_s16, %s1983_s16   ;;  %s1599_s15 = sphi %s1636_s15, %s1982_s15  }
   0x3   : > { %p35_p1 = scmp.ge.s32.totalorder %s33_s18, 8  ;;  %p224_p2 = scmp.lt.s32.totalorder %s1607_s17, 9 }
   0x5   : > { %s1985_s18 = smov (%p35_p1, %s33_s18), 0  ;;  %p225_p3 = pnand %p1348_p0, %p224_p2 }
   0x6   : > { %v1527_v0 = vld [vmem:[%s1978_s1] sm:$0xff] (!%p225_p3)   ;;  %v1609_v1 = vmov (!%p225_p3), 0   ;;  %s1349_s21 = sshll.u32 (!%p225_p3), %s1599_s15, 5  ;;  %v1528_v2 = vld [vmem:[%s1978_s1 + $0x8] sm:$0xff] (!%p225_p3)   ;;  %v1529_v3 = vld [vmem:[%s1978_s1 + $0x10] sm:$0xff] (!%p225_p3)   ;;  %vm313_vm0 = vcmask (!%p225_p3), 523264  }
   0x7   : > { %228 = sbr.rel (%p225_p3) target bundleno = 338 (0x152), region = 36  ;;  %683 = vmatprep.subr.bf16.mxu0 (!%p225_p3), %v1609_v1  ;;  %1481 = vmatprep.subr.bf16.mxu1 (!%p225_p3), %v1609_v1  ;;  %p274_p4 = scmp.lt.s32.totalorder (!%p225_p3), %s1349_s21, 255  ;;  %v1610_v4 = vmov (!%p225_p3), 0.0   ;;  %v1530_v5 = vld [vmem:[%s1978_s1 + $0x18] sm:$0xff] (!%p225_p3)   ;;  %vm634_vm1 = vcmask (!%p225_p3), 261120   ;;  %v1531_v8 = vld [vmem:[%s1978_s1 + $0x20] sm:$0xff] (!%p225_p3)  }
   0x8   : > { %684 = vmatpush1.bf16.msra.mxu0 (!%p225_p3), %v1527_v0  ;;  %1491 = vmatpush1.bf16.msra.mxu1 (!%p225_p3), %v1527_v0  ;;  %314 = vst.msk [vmem:[#allocation2] sm:$0xff] (!%p225_p3), %vm313_vm0, %v1610_v4  ;;  %315 = vst.msk [vmem:[#allocation2 + $0x8] sm:$0xff] (!%p225_p3), %vm313_vm0, %v1610_v4  ;;  %v1532_v9 = vld [vmem:[%s1978_s1 + $0x28] sm:$0xff] (!%p225_p3)   ;;  %v1533_v10 = vld [vmem:[%s1978_s1 + $0x30] sm:$0xff] (!%p225_p3)   ;;  %vm1182_vm2 = vcmask (!%p225_p3), 519168  }
   0x9   : > { %685 = vmatprep.subr.bf16.mxu0 (!%p225_p3), %v1609_v1  ;;  %1482 = vmatprep.subr.bf16.mxu1 (!%p225_p3), %v1609_v1  ;;  %316 = vst.msk [vmem:[#allocation2 + $0x10] sm:$0xff] (!%p225_p3), %vm313_vm0, %v1610_v4  ;;  %317 = vst.msk [vmem:[#allocation2 + $0x18] sm:$0xff] (!%p225_p3), %vm313_vm0, %v1610_v4  ;;  %v1534_v11 = vld [vmem:[%s1978_s1 + $0x38] sm:$0xff] (!%p225_p3)   ;;  %v1535_v12 = vld [vmem:[%s1978_s1 + $0x40] sm:$0xff] (!%p225_p3)  }
   0xa   : > { %318 = vst.msk [vmem:[#allocation2 + $0x20] sm:$0xff] (!%p225_p3), %vm313_vm0, %v1610_v4  ;;  %319 = vst.msk [vmem:[#allocation2 + $0x28] sm:$0xff] (!%p225_p3), %vm313_vm0, %v1610_v4  ;;  %v1536_v13 = vld [vmem:[%s1978_s1 + $0x48] sm:$0xff] (!%p225_p3)   ;;  %v1799_v62 = vld [vmem:[%s1979_s2] ss:$0 sm:$0xff] (!%p225_p3) }
   0xb   : > { %320 = vst.msk [vmem:[#allocation2 + $0x30] sm:$0xff] (!%p225_p3), %vm313_vm0, %v1610_v4  ;;  %321 = vst.msk [vmem:[#allocation2 + $0x38] sm:$0xff] (!%p225_p3), %vm313_vm0, %v1610_v4 }
   0xc   : > { %686 = vmatpush1.bf16.msra.mxu0 (!%p225_p3), %v1528_v2  ;;  %1492 = vmatpush1.bf16.msra.mxu1 (!%p225_p3), %v1528_v2  ;;  %322 = vst.msk [vmem:[#allocation2 + $0x40] sm:$0xff] (!%p225_p3), %vm313_vm0, %v1610_v4  ;;  %323 = vst.msk [vmem:[#allocation2 + $0x48] sm:$0xff] (!%p225_p3), %vm313_vm0, %v1610_v4 }
   0xd   : > { %687 = vmatprep.subr.bf16.mxu0 (!%p225_p3), %v1609_v1  ;;  %1483 = vmatprep.subr.bf16.mxu1 (!%p225_p3), %v1609_v1  ;;  %324 = vst.msk [vmem:[#allocation2 + $0x50] sm:$0xff] (!%p225_p3), %vm313_vm0, %v1610_v4  ;;  %325 = vst.msk [vmem:[#allocation2 + $0x58] sm:$0xff] (!%p225_p3), %vm313_vm0, %v1610_v4 }
   0xe   : > { %s1987_s21 = smov (!%p274_p4, %s1349_s21), 255  ;;  %326 = vst.msk [vmem:[#allocation2 + $0x60] sm:$0xff] %vm313_vm0, %v1610_v4  ;;  %327 = vst.msk [vmem:[#allocation2 + $0x68] sm:$0xff] %vm313_vm0, %v1610_v4 }
   0xf   : > { %s1448_s26 = sshll.u32 %s1987_s21, 3  ;;  %328 = vst.msk [vmem:[#allocation2 + $0x70] sm:$0xff] %vm313_vm0, %v1610_v4  ;;  %329 = vst.msk [vmem:[#allocation2 + $0x78] sm:$0xff] %vm313_vm0, %v1610_v4  ;;  %v346_v44 = vld [vmem:[#allocation2] sm:$0xff]  ;;  %v347_v48 = vld [vmem:[#allocation2 + $0x8] sm:$0xff] }
  0x10   : > { %s1675_s29 = scalar_lea.vmem %s1977_s0, %s1448_s26  ;;  %330 = vst.msk [vmem:[#allocation2 + $0x80] sm:$0xff] %vm313_vm0, %v1610_v4  ;;  %331 = vst.msk [vmem:[#allocation2 + $0x88] sm:$0xff] %vm313_vm0, %v1610_v4  ;;  %688 = vmatpush1.bf16.msra.mxu0 %v1529_v3  ;;  %1493 = vmatpush1.bf16.msra.mxu1 %v1529_v3  ;;  %v348_v60 = vld [vmem:[#allocation2 + $0x10] sm:$0xff]  ;;  %s1353_s26 = sshll.u32 %s1987_s21, 2 }
  0x11   : > { %332 = vst.msk [vmem:[#allocation2 + $0x90] sm:$0xff] %vm313_vm0, %v1610_v4  ;;  %333 = vst.msk [vmem:[#allocation2 + $0x98] sm:$0xff] %vm313_vm0, %v1610_v4  ;;  %689 = vmatprep.subr.bf16.mxu0 %v1609_v1  ;;  %1484 = vmatprep.subr.bf16.mxu1 %v1609_v1  ;;  %v1539_v6 = vld [vmem:[%s1675_s29 + $0x4] ss:$8 sps:$4 sm:$0xff]   ;;  %v1537_v14 = vld [vmem:[%s1675_s29] ss:$8 sps:$4 sm:$0xff]   ;;  %s1822_s28 = scalar_lea.vmem %s1981_s4, %s1353_s26 }
  0x12   : > { %334 = vst.msk [vmem:[#allocation2 + $0xa0] sm:$0xff] %vm313_vm0, %v1610_v4  ;;  %335 = vst.msk [vmem:[#allocation2 + $0xa8] sm:$0xff] %vm313_vm0, %v1610_v4  ;;  %v1542_v7 = vld [vmem:[%s1675_s29 + $0x84] ss:$8 sps:$4 sm:$0xff]   ;;  %1396 = vmatprep.mubr.msk.bf16.mxu0 %vm634_vm1, %v1539_v6  ;;  %v1540_v15 = vld [vmem:[%s1675_s29 + $0x80] ss:$8 sps:$4 sm:$0xff]  }
  0x13   : > { %336 = vst.msk [vmem:[#allocation2 + $0xb0] sm:$0xff] %vm313_vm0, %v1610_v4  ;;  %337 = vst.msk [vmem:[#allocation2 + $0xb8] sm:$0xff] %vm313_vm0, %v1610_v4  ;;  %1404 = vmatprep.mubr.msk.bf16.mxu1 %vm634_vm1, %v1542_v7  ;;  %v1543_v16 = vld [vmem:[%s1675_s29 + $0x14] ss:$8 sps:$4 sm:$0xff]   ;;  %v1547_v18 = vld [vmem:[%s1675_s29 + $0x10] ss:$8 sps:$4 sm:$0xff]  }
  0x14   : > { %338 = vst.msk [vmem:[#allocation2 + $0xc0] sm:$0xff] %vm313_vm0, %v1610_v4  ;;  %339 = vst.msk [vmem:[#allocation2 + $0xc8] sm:$0xff] %vm313_vm0, %v1610_v4  ;;  %690 = vmatpush1.bf16.msra.mxu0 %v1530_v5  ;;  %1494 = vmatpush1.bf16.msra.mxu1 %v1530_v5  ;;  %v1545_v17 = vld [vmem:[%s1675_s29 + $0x94] ss:$8 sps:$4 sm:$0xff]   ;;  %v1548_v19 = vld [vmem:[%s1675_s29 + $0x90] ss:$8 sps:$4 sm:$0xff]  }
  0x15   : > { %340 = vst.msk [vmem:[#allocation2 + $0xd0] sm:$0xff] %vm313_vm0, %v1610_v4  ;;  %341 = vst.msk [vmem:[#allocation2 + $0xd8] sm:$0xff] %vm313_vm0, %v1610_v4  ;;  %691 = vmatprep.subr.bf16.mxu0 %v1609_v1  ;;  %1485 = vmatprep.subr.bf16.mxu1 %v1609_v1  ;;  %v1549_v20 = vld [vmem:[%s1675_s29 + $0x24] ss:$8 sps:$4 sm:$0xff]   ;;  %v1553_v22 = vld [vmem:[%s1675_s29 + $0x20] ss:$8 sps:$4 sm:$0xff]  }
  0x16   : > { %342 = vst.msk [vmem:[#allocation2 + $0xe0] sm:$0xff] %vm313_vm0, %v1610_v4  ;;  %343 = vst.msk [vmem:[#allocation2 + $0xe8] sm:$0xff] %vm313_vm0, %v1610_v4  ;;  %v1551_v21 = vld [vmem:[%s1675_s29 + $0xa4] ss:$8 sps:$4 sm:$0xff]   ;;  %v1554_v23 = vld [vmem:[%s1675_s29 + $0xa0] ss:$8 sps:$4 sm:$0xff]  }
  0x17   : > { %344 = vst.msk [vmem:[#allocation2 + $0xf0] sm:$0xff] %vm313_vm0, %v1610_v4  ;;  %345 = vst.msk [vmem:[#allocation2 + $0xf8] sm:$0xff] %vm313_vm0, %v1610_v4  ;;  %v1555_v24 = vld [vmem:[%s1675_s29 + $0x34] ss:$8 sps:$4 sm:$0xff]   ;;  %v1559_v26 = vld [vmem:[%s1675_s29 + $0x30] ss:$8 sps:$4 sm:$0xff]  }
  0x18   : > { %692 = vmatpush1.bf16.msra.mxu0 %v1531_v8  ;;  %1495 = vmatpush1.bf16.msra.mxu1 %v1531_v8  ;;  %v1557_v25 = vld [vmem:[%s1675_s29 + $0xb4] ss:$8 sps:$4 sm:$0xff]   ;;  %v1560_v27 = vld [vmem:[%s1675_s29 + $0xb0] ss:$8 sps:$4 sm:$0xff]   ;;  %v1561_v28 = vld [vmem:[%s1675_s29 + $0x44] ss:$8 sps:$4 sm:$0xff]  }
  0x19   : > { %693 = vmatprep.subr.bf16.mxu0 %v1609_v1  ;;  %1486 = vmatprep.subr.bf16.mxu1 %v1609_v1  ;;  %v1563_v29 = vld [vmem:[%s1675_s29 + $0xc4] ss:$8 sps:$4 sm:$0xff]   ;;  %v1565_v30 = vld [vmem:[%s1675_s29 + $0x40] ss:$8 sps:$4 sm:$0xff]   ;;  %v1567_v32 = vld [vmem:[%s1675_s29 + $0x54] ss:$8 sps:$4 sm:$0xff]  }
  0x1a   : > { %v1566_v31 = vld [vmem:[%s1675_s29 + $0xc0] ss:$8 sps:$4 sm:$0xff]   ;;  %v1569_v33 = vld [vmem:[%s1675_s29 + $0xd4] ss:$8 sps:$4 sm:$0xff]   ;;  %v1571_v34 = vld [vmem:[%s1675_s29 + $0x50] ss:$8 sps:$4 sm:$0xff]  }
  0x1b   : > { %v1572_v35 = vld [vmem:[%s1675_s29 + $0xd0] ss:$8 sps:$4 sm:$0xff]   ;;  %v1573_v36 = vld [vmem:[%s1675_s29 + $0x64] ss:$8 sps:$4 sm:$0xff]   ;;  %v1577_v38 = vld [vmem:[%s1675_s29 + $0x60] ss:$8 sps:$4 sm:$0xff]  }
  0x1c   : > { %694 = vmatpush1.bf16.msra.mxu0 %v1532_v9  ;;  %1496 = vmatpush1.bf16.msra.mxu1 %v1532_v9  ;;  %v1575_v37 = vld [vmem:[%s1675_s29 + $0xe4] ss:$8 sps:$4 sm:$0xff]   ;;  %v1578_v39 = vld [vmem:[%s1675_s29 + $0xe0] ss:$8 sps:$4 sm:$0xff]   ;;  %v1579_v40 = vld [vmem:[%s1675_s29 + $0x74] ss:$8 sps:$4 sm:$0xff]  }
  0x1d   : > { %695 = vmatprep.subr.bf16.mxu0 %v1609_v1  ;;  %1487 = vmatprep.subr.bf16.mxu1 %v1609_v1  ;;  %v1581_v41 = vld [vmem:[%s1675_s29 + $0xf4] ss:$8 sps:$4 sm:$0xff]   ;;  %v1583_v42 = vld [vmem:[%s1675_s29 + $0x70] ss:$8 sps:$4 sm:$0xff]   ;;  %v362_v45 = vld [vmem:[#allocation2 + $0x80] sm:$0xff] }
  0x1e   : > { %v1584_v43 = vld [vmem:[%s1675_s29 + $0xf0] ss:$8 sps:$4 sm:$0xff]   ;;  %v363_v49 = vld [vmem:[#allocation2 + $0x88] sm:$0xff]  ;;  %v1804_v8 = vld [vmem:[%s1980_s3] ss:$0 sm:$0xff] }
  0x1f   : > { %v364_v61 = vld [vmem:[#allocation2 + $0x90] sm:$0xff]  ;;  %v365_v2 = vld [vmem:[#allocation2 + $0x98] sm:$0xff] }
  0x20   : > { %696 = vmatpush1.bf16.msra.mxu0 %v1533_v10  ;;  %1497 = vmatpush1.bf16.msra.mxu1 %v1533_v10 }
  0x21   : > { %697 = vmatprep.subr.bf16.mxu0 %v1609_v1  ;;  %1488 = vmatprep.subr.bf16.mxu1 %v1609_v1 }
  0x24   : > { %698 = vmatpush1.bf16.msra.mxu0 %v1534_v11  ;;  %1498 = vmatpush1.bf16.msra.mxu1 %v1534_v11 }
  0x25   : > { %699 = vmatprep.subr.bf16.mxu0 %v1609_v1  ;;  %1489 = vmatprep.subr.bf16.mxu1 %v1609_v1 }
  0x28   : > { %700 = vmatpush1.bf16.msra.mxu0 %v1535_v12  ;;  %1499 = vmatpush1.bf16.msra.mxu1 %v1535_v12 }
  0x29   : > { %701 = vmatprep.subr.bf16.mxu0 %v1609_v1  ;;  %1490 = vmatprep.subr.bf16.mxu1 %v1609_v1  ;;  %v349_v1 = vld [vmem:[#allocation2 + $0x18] sm:$0xff] }
  0x2c   : > { %702 = vmatpush1.bf16.msra.mxu0 %v1536_v13  ;;  %1500 = vmatpush1.bf16.msra.mxu1 %v1536_v13 }
  0x2f   : > { %716 = vmatmul.mubr.bf16.vlgmr.msra.gmra.mrb[0].mxu0 %v1537_v14  ;;  %780 = vmatmul.mubr.bf16.vlgmr.msra.gmra.mrb[0].mxu1 %v1540_v15 }
  0x30   : > { %1397 = vmatprep.mubr.msk.bf16.mxu0 %vm634_vm1, %v1543_v16  ;;  %1405 = vmatprep.mubr.msk.bf16.mxu1 %vm634_vm1, %v1545_v17 }
  0x37   : > { %724 = vmatmul.mubr.bf16.gmra.mrb[4].mxu0 %v1547_v18  ;;  %788 = vmatmul.mubr.bf16.gmra.mrb[4].mxu1 %v1548_v19 }
  0x38   : > { %1398 = vmatprep.mubr.msk.bf16.mxu0 %vm634_vm1, %v1549_v20  ;;  %1406 = vmatprep.mubr.msk.bf16.mxu1 %vm634_vm1, %v1551_v21 }
  0x3f   : > { %732 = vmatmul.mubr.bf16.gmra.mrb[8].mxu0 %v1553_v22  ;;  %796 = vmatmul.mubr.bf16.gmra.mrb[8].mxu1 %v1554_v23 }
  0x40   : > { %1399 = vmatprep.mubr.msk.bf16.mxu0 %vm634_vm1, %v1555_v24  ;;  %1407 = vmatprep.mubr.msk.bf16.mxu1 %vm634_vm1, %v1557_v25 }
  0x47   : > { %740 = vmatmul.mubr.bf16.gmra.mrb[12].mxu0 %v1559_v26  ;;  %804 = vmatmul.mubr.bf16.gmra.mrb[12].mxu1 %v1560_v27 }
  0x48   : > { %1400 = vmatprep.mubr.msk.bf16.mxu0 %vm634_vm1, %v1561_v28  ;;  %1408 = vmatprep.mubr.msk.bf16.mxu1 %vm634_vm1, %v1563_v29  ;;  %v350_v28 = vld [vmem:[#allocation2 + $0x20] sm:$0xff] }
  0x49   : > { %v366_v29 = vld [vmem:[#allocation2 + $0xa0] sm:$0xff] }
  0x4f   : > { %748 = vmatmul.mubr.bf16.gmra.mrb[16].mxu0 %v1565_v30  ;;  %812 = vmatmul.mubr.bf16.gmra.mrb[16].mxu1 %v1566_v31 }
  0x50   : > { %1401 = vmatprep.mubr.msk.bf16.mxu0 %vm634_vm1, %v1567_v32  ;;  %1409 = vmatprep.mubr.msk.bf16.mxu1 %vm634_vm1, %v1569_v33 }
  0x57   : > { %756 = vmatmul.mubr.bf16.gmra.mrb[20].mxu0 %v1571_v34  ;;  %820 = vmatmul.mubr.bf16.gmra.mrb[20].mxu1 %v1572_v35 }
  0x58   : > { %1402 = vmatprep.mubr.msk.bf16.mxu0 %vm634_vm1, %v1573_v36  ;;  %1410 = vmatprep.mubr.msk.bf16.mxu1 %vm634_vm1, %v1575_v37 }
  0x5f   : > { %764 = vmatmul.mubr.bf16.gmra.mrb[24].mxu0 %v1577_v38  ;;  %828 = vmatmul.mubr.bf16.gmra.mrb[24].mxu1 %v1578_v39  ;;  %v351_v38 = vld [vmem:[#allocation2 + $0x28] sm:$0xff] }
  0x60   : > { %1403 = vmatprep.mubr.msk.bf16.mxu0 %vm634_vm1, %v1579_v40  ;;  %1411 = vmatprep.mubr.msk.bf16.mxu1 %vm634_vm1, %v1581_v41  ;;  %v367_v39 = vld [vmem:[#allocation2 + $0xa8] sm:$0xff] }
  0x67   : > { %772 = vmatmul.mubr.bf16.gmra.mrb[28].mxu0 %v1583_v42  ;;  %836 = vmatmul.mubr.bf16.gmra.mrb[28].mxu1 %v1584_v43 }
 0x102   : > { %v717_v46 = vpop.f32.mrb[0].mxu0  ;;  %v781_v47 = vpop.f32.mrb[0].mxu1 }
 0x103   : > { %v844_v50 = vadd.f32 %v717_v46, %v346_v44  ;;  %v860_v51 = vadd.f32 %v781_v47, %v362_v45  ;;  %v719_v52 = vpop.f32.mrb[1].mxu0  ;;  %v783_v53 = vpop.f32.mrb[1].mxu1 }
 0x104   : > { %v720_v54 = vpop.f32.mrb[2].mxu0  ;;  %v784_v55 = vpop.f32.mrb[2].mxu1 }
 0x105   : > { %877 = vst.msk [vmem:[#allocation2] sm:$0xff] %vm313_vm0, %v844_v50  ;;  %893 = vst.msk [vmem:[#allocation2 + $0x80] sm:$0xff] %vm313_vm0, %v860_v51  ;;  %v845_v56 = vadd.f32 %v720_v54, %v347_v48  ;;  %v861_v57 = vadd.f32 %v784_v55, %v363_v49  ;;  %v722_v58 = vpop.f32.mrb[3].mxu0  ;;  %v786_v59 = vpop.f32.mrb[3].mxu1 }
 0x107   : > { %878 = vst.msk [vmem:[#allocation2 + $0x8] sm:$0xff] %vm313_vm0, %v845_v56  ;;  %894 = vst.msk [vmem:[#allocation2 + $0x88] sm:$0xff] %vm313_vm0, %v861_v57 }
 0x10a   : > { %v725_v63 = vpop.f32.mrb[4].mxu0  ;;  %v789_v0 = vpop.f32.mrb[4].mxu1 }
 0x10b   : > { %v846_v3 = vadd.f32 %v725_v63, %v348_v60  ;;  %v862_v4 = vadd.f32 %v789_v0, %v364_v61  ;;  %v727_v5 = vpop.f32.mrb[5].mxu0  ;;  %v791_v6 = vpop.f32.mrb[5].mxu1 }
 0x10c   : > { %v912_v7 = vld [vmem:[#allocation2] sm:$0xff]  ;;  %v728_v10 = vpop.f32.mrb[6].mxu0  ;;  %v792_v11 = vpop.f32.mrb[6].mxu1  ;;  %v353_v5 = vld [vmem:[#allocation2 + $0x38] sm:$0xff] }
 0x10d   : > { %v928_v9 = vld [vmem:[#allocation2 + $0x80] sm:$0xff]  ;;  %v951_v12 = vmul.f32 %v1799_v62, %v912_v7  ;;  %879 = vst.msk [vmem:[#allocation2 + $0x10] sm:$0xff] %vm313_vm0, %v846_v3  ;;  %895 = vst.msk [vmem:[#allocation2 + $0x90] sm:$0xff] %vm313_vm0, %v862_v4  ;;  %v847_v14 = vadd.f32 %v728_v10, %v349_v1  ;;  %v863_v15 = vadd.f32 %v792_v11, %v365_v2  ;;  %v730_v16 = vpop.f32.mrb[7].mxu0  ;;  %v794_v17 = vpop.f32.mrb[7].mxu1  ;;  %v352_v1 = vld [vmem:[#allocation2 + $0x30] sm:$0xff] }
 0x10e   : > { %v967_v13 = vmul.f32 %v1799_v62, %v928_v9  ;;  %v913_v18 = vld [vmem:[#allocation2 + $0x8] sm:$0xff]  ;;  %v368_v2 = vld [vmem:[#allocation2 + $0xb0] sm:$0xff]  ;;  %v369_v6 = vld [vmem:[#allocation2 + $0xb8] sm:$0xff] }
 0x10f   : > { %v929_v19 = vld [vmem:[#allocation2 + $0x88] sm:$0xff]  ;;  %v990_v20 = vadd.f32 %v1804_v8, %v951_v12  ;;  %v952_v22 = vmul.f32 %v1799_v62, %v913_v18  ;;  %880 = vst.msk [vmem:[#allocation2 + $0x18] sm:$0xff] %vm313_vm0, %v847_v14  ;;  %896 = vst.msk [vmem:[#allocation2 + $0x98] sm:$0xff] %vm313_vm0, %v863_v15 }
 0x110   : > { %v1006_v21 = vadd.f32 %v1804_v8, %v967_v13  ;;  %v968_v23 = vmul.f32 %v1799_v62, %v929_v19 }
 0x111   : > { %v1022_v24 = vmax.f32 %v990_v20, 0.0  ;;  %v991_v26 = vadd.f32 %v1804_v8, %v952_v22 }
 0x112   : > { %v1038_v25 = vmax.f32 %v1006_v21, 0.0  ;;  %v1007_v27 = vadd.f32 %v1804_v8, %v968_v23  ;;  %v733_v30 = vpop.f32.mrb[8].mxu0  ;;  %v797_v31 = vpop.f32.mrb[8].mxu1 }
 0x113   : > { %v1449_v32 = vpack.c.bf16 %v1022_v24, %v1022_v24  ;;  %v1023_v34 = vmax.f32 %v991_v26, 0.0  ;;  %v735_v36 = vpop.f32.mrb[9].mxu0  ;;  %v799_v37 = vpop.f32.mrb[9].mxu1  ;;  %v848_v42 = vadd.f32 %v733_v30, %v350_v28  ;;  %v864_v43 = vadd.f32 %v797_v31, %v366_v29 }
 0x114   : > { %v1465_v33 = vpack.c.bf16 %v1038_v25, %v1038_v25  ;;  %v1039_v35 = vmax.f32 %v1007_v27, 0.0  ;;  %v914_v40 = vld [vmem:[#allocation2 + $0x10] sm:$0xff]  ;;  %v736_v44 = vpop.f32.mrb[10].mxu0  ;;  %v800_v45 = vpop.f32.mrb[10].mxu1 }
 0x115   : > { %v930_v41 = vld [vmem:[#allocation2 + $0x90] sm:$0xff]  ;;  %1183 = vst.msk [vmem:[%s1822_s28] sm:$0xf] %vm1182_vm2, %v1449_v32  ;;  %v1450_v46 = vpack.c.bf16 %v1023_v34, %v1023_v34  ;;  %v953_v48 = vmul.f32 %v1799_v62, %v914_v40  ;;  %v738_v50 = vpop.f32.mrb[11].mxu0  ;;  %v802_v51 = vpop.f32.mrb[11].mxu1  ;;  %v849_v54 = vadd.f32 %v736_v44, %v351_v38  ;;  %v865_v55 = vadd.f32 %v800_v45, %v367_v39  ;;  %v354_v34 = vld [vmem:[#allocation2 + $0x40] sm:$0xff] }
 0x116   : > { %1199 = vst.msk [vmem:[%s1822_s28 + $0x40] sm:$0xf] %vm1182_vm2, %v1465_v33  ;;  %v1466_v47 = vpack.c.bf16 %v1039_v35, %v1039_v35  ;;  %v969_v49 = vmul.f32 %v1799_v62, %v930_v41  ;;  %v915_v52 = vld [vmem:[#allocation2 + $0x18] sm:$0xff]  ;;  %v370_v35 = vld [vmem:[#allocation2 + $0xc0] sm:$0xff] }
 0x117   : > { %v931_v53 = vld [vmem:[#allocation2 + $0x98] sm:$0xff]  ;;  %881 = vst.msk [vmem:[#allocation2 + $0x20] sm:$0xff] %vm313_vm0, %v848_v42  ;;  %897 = vst.msk [vmem:[#allocation2 + $0xa0] sm:$0xff] %vm313_vm0, %v864_v43  ;;  %v992_v56 = vadd.f32 %v1804_v8, %v953_v48  ;;  %v954_v58 = vmul.f32 %v1799_v62, %v915_v52  ;;  %v355_v42 = vld [vmem:[#allocation2 + $0x48] sm:$0xff] }
 0x118   : > { %1184 = vst.msk [vmem:[%s1822_s28 + $0x4] sm:$0xf] %vm1182_vm2, %v1450_v46  ;;  %1200 = vst.msk [vmem:[%s1822_s28 + $0x44] sm:$0xf] %vm1182_vm2, %v1466_v47  ;;  %v1008_v57 = vadd.f32 %v1804_v8, %v969_v49  ;;  %v970_v59 = vmul.f32 %v1799_v62, %v931_v53  ;;  %v371_v43 = vld [vmem:[#allocation2 + $0xc8] sm:$0xff] }
 0x119   : > { %882 = vst.msk [vmem:[#allocation2 + $0x28] sm:$0xff] %vm313_vm0, %v849_v54  ;;  %898 = vst.msk [vmem:[#allocation2 + $0xa8] sm:$0xff] %vm313_vm0, %v865_v55  ;;  %v1024_v60 = vmax.f32 %v992_v56, 0.0  ;;  %v993_v63 = vadd.f32 %v1804_v8, %v954_v58 }
 0x11a   : > { %v1040_v61 = vmax.f32 %v1008_v57, 0.0  ;;  %v1009_v0 = vadd.f32 %v1804_v8, %v970_v59  ;;  %v741_v3 = vpop.f32.mrb[12].mxu0  ;;  %v805_v4 = vpop.f32.mrb[12].mxu1 }
 0x11b   : > { %v1451_v7 = vpack.c.bf16 %v1024_v60, %v1024_v60  ;;  %v1025_v10 = vmax.f32 %v993_v63, 0.0  ;;  %v743_v12 = vpop.f32.mrb[13].mxu0  ;;  %v807_v13 = vpop.f32.mrb[13].mxu1  ;;  %v850_v14 = vadd.f32 %v741_v3, %v352_v1  ;;  %v866_v15 = vadd.f32 %v805_v4, %v368_v2 }
 0x11c   : > { %v1467_v9 = vpack.c.bf16 %v1040_v61, %v1040_v61  ;;  %v1041_v11 = vmax.f32 %v1009_v0, 0.0  ;;  %v744_v16 = vpop.f32.mrb[14].mxu0  ;;  %v808_v17 = vpop.f32.mrb[14].mxu1 }
 0x11d   : > { %1185 = vst.msk [vmem:[%s1822_s28 + $0x8] sm:$0xf] %vm1182_vm2, %v1451_v7  ;;  %v1452_v18 = vpack.c.bf16 %v1025_v10, %v1025_v10  ;;  %v851_v22 = vadd.f32 %v744_v16, %v353_v5  ;;  %v867_v23 = vadd.f32 %v808_v17, %v369_v6  ;;  %v746_v24 = vpop.f32.mrb[15].mxu0  ;;  %v810_v25 = vpop.f32.mrb[15].mxu1  ;;  %v356_v7 = vld [vmem:[#allocation2 + $0x50] sm:$0xff] }
 0x11e   : > { %1201 = vst.msk [vmem:[%s1822_s28 + $0x48] sm:$0xf] %vm1182_vm2, %v1467_v9  ;;  %v1468_v19 = vpack.c.bf16 %v1041_v11, %v1041_v11  ;;  %v916_v20 = vld [vmem:[#allocation2 + $0x20] sm:$0xff]  ;;  %v372_v9 = vld [vmem:[#allocation2 + $0xd0] sm:$0xff] }
 0x11f   : > { %v932_v21 = vld [vmem:[#allocation2 + $0xa0] sm:$0xff]  ;;  %v955_v26 = vmul.f32 %v1799_v62, %v916_v20  ;;  %883 = vst.msk [vmem:[#allocation2 + $0x30] sm:$0xff] %vm313_vm0, %v850_v14  ;;  %899 = vst.msk [vmem:[#allocation2 + $0xb0] sm:$0xff] %vm313_vm0, %v866_v15 }
 0x120   : > { %v971_v27 = vmul.f32 %v1799_v62, %v932_v21  ;;  %1186 = vst.msk [vmem:[%s1822_s28 + $0xc] sm:$0xf] %vm1182_vm2, %v1452_v18  ;;  %1202 = vst.msk [vmem:[%s1822_s28 + $0x4c] sm:$0xf] %vm1182_vm2, %v1468_v19  ;;  %v917_v28 = vld [vmem:[#allocation2 + $0x28] sm:$0xff] }
 0x121   : > { %v933_v29 = vld [vmem:[#allocation2 + $0xa8] sm:$0xff]  ;;  %884 = vst.msk [vmem:[#allocation2 + $0x38] sm:$0xff] %vm313_vm0, %v851_v22  ;;  %900 = vst.msk [vmem:[#allocation2 + $0xb8] sm:$0xff] %vm313_vm0, %v867_v23  ;;  %v994_v30 = vadd.f32 %v1804_v8, %v955_v26  ;;  %v956_v32 = vmul.f32 %v1799_v62, %v917_v28  ;;  %v357_v22 = vld [vmem:[#allocation2 + $0x58] sm:$0xff] }
 0x122   : > { %v1010_v31 = vadd.f32 %v1804_v8, %v971_v27  ;;  %v972_v33 = vmul.f32 %v1799_v62, %v933_v29  ;;  %v749_v40 = vpop.f32.mrb[16].mxu0  ;;  %v813_v41 = vpop.f32.mrb[16].mxu1  ;;  %v373_v23 = vld [vmem:[#allocation2 + $0xd8] sm:$0xff] }
 0x123   : > { %v1026_v36 = vmax.f32 %v994_v30, 0.0  ;;  %v995_v38 = vadd.f32 %v1804_v8, %v956_v32  ;;  %v852_v44 = vadd.f32 %v749_v40, %v354_v34  ;;  %v868_v45 = vadd.f32 %v813_v41, %v370_v35  ;;  %v751_v46 = vpop.f32.mrb[17].mxu0  ;;  %v815_v47 = vpop.f32.mrb[17].mxu1 }
 0x124   : > { %v1042_v37 = vmax.f32 %v1010_v31, 0.0  ;;  %v1011_v39 = vadd.f32 %v1804_v8, %v972_v33  ;;  %v752_v52 = vpop.f32.mrb[18].mxu0  ;;  %v816_v53 = vpop.f32.mrb[18].mxu1 }
 0x125   : > { %v1453_v48 = vpack.c.bf16 %v1026_v36, %v1026_v36  ;;  %v1027_v50 = vmax.f32 %v995_v38, 0.0  ;;  %885 = vst.msk [vmem:[#allocation2 + $0x40] sm:$0xff] %vm313_vm0, %v852_v44  ;;  %901 = vst.msk [vmem:[#allocation2 + $0xc0] sm:$0xff] %vm313_vm0, %v868_v45  ;;  %v853_v56 = vadd.f32 %v752_v52, %v355_v42  ;;  %v869_v57 = vadd.f32 %v816_v53, %v371_v43  ;;  %v754_v58 = vpop.f32.mrb[19].mxu0  ;;  %v818_v59 = vpop.f32.mrb[19].mxu1 }
 0x126   : > { %v1469_v49 = vpack.c.bf16 %v1042_v37, %v1042_v37  ;;  %v1043_v51 = vmax.f32 %v1011_v39, 0.0  ;;  %v918_v54 = vld [vmem:[#allocation2 + $0x30] sm:$0xff]  ;;  %v359_v58 = vld [vmem:[#allocation2 + $0x68] sm:$0xff] }
 0x127   : > { %v934_v55 = vld [vmem:[#allocation2 + $0xb0] sm:$0xff]  ;;  %1187 = vst.msk [vmem:[%s1822_s28 + $0x10] sm:$0xf] %vm1182_vm2, %v1453_v48  ;;  %v1454_v60 = vpack.c.bf16 %v1027_v50, %v1027_v50  ;;  %v957_v63 = vmul.f32 %v1799_v62, %v918_v54  ;;  %v358_v48 = vld [vmem:[#allocation2 + $0x60] sm:$0xff]  ;;  %v375_v59 = vld [vmem:[#allocation2 + $0xe8] sm:$0xff] }
 0x128   : > { %1203 = vst.msk [vmem:[%s1822_s28 + $0x50] sm:$0xf] %vm1182_vm2, %v1469_v49  ;;  %v1470_v61 = vpack.c.bf16 %v1043_v51, %v1043_v51  ;;  %v973_v0 = vmul.f32 %v1799_v62, %v934_v55  ;;  %v919_v1 = vld [vmem:[#allocation2 + $0x38] sm:$0xff]  ;;  %v374_v49 = vld [vmem:[#allocation2 + $0xe0] sm:$0xff] }
 0x129   : > { %v935_v2 = vld [vmem:[#allocation2 + $0xb8] sm:$0xff]  ;;  %v958_v3 = vmul.f32 %v1799_v62, %v919_v1  ;;  %886 = vst.msk [vmem:[#allocation2 + $0x48] sm:$0xff] %vm313_vm0, %v853_v56  ;;  %902 = vst.msk [vmem:[#allocation2 + $0xc8] sm:$0xff] %vm313_vm0, %v869_v57  ;;  %v996_v5 = vadd.f32 %v1804_v8, %v957_v63 }
 0x12a   : > { %v974_v4 = vmul.f32 %v1799_v62, %v935_v2  ;;  %1188 = vst.msk [vmem:[%s1822_s28 + $0x14] sm:$0xf] %vm1182_vm2, %v1454_v60  ;;  %1204 = vst.msk [vmem:[%s1822_s28 + $0x54] sm:$0xf] %vm1182_vm2, %v1470_v61  ;;  %v1012_v6 = vadd.f32 %v1804_v8, %v973_v0  ;;  %v757_v14 = vpop.f32.mrb[20].mxu0  ;;  %v821_v15 = vpop.f32.mrb[20].mxu1 }
 0x12b   : > { %v997_v10 = vadd.f32 %v1804_v8, %v958_v3  ;;  %v1028_v12 = vmax.f32 %v996_v5, 0.0  ;;  %v854_v18 = vadd.f32 %v757_v14, %v356_v7  ;;  %v870_v19 = vadd.f32 %v821_v15, %v372_v9  ;;  %v759_v20 = vpop.f32.mrb[21].mxu0  ;;  %v823_v21 = vpop.f32.mrb[21].mxu1 }
 0x12c   : > { %v1013_v11 = vadd.f32 %v1804_v8, %v974_v4  ;;  %v1044_v13 = vmax.f32 %v1012_v6, 0.0  ;;  %v920_v26 = vld [vmem:[#allocation2 + $0x40] sm:$0xff]  ;;  %v760_v28 = vpop.f32.mrb[22].mxu0  ;;  %v824_v29 = vpop.f32.mrb[22].mxu1 }
 0x12d   : > { %v1029_v16 = vmax.f32 %v997_v10, 0.0  ;;  %v1455_v24 = vpack.c.bf16 %v1028_v12, %v1028_v12  ;;  %v936_v27 = vld [vmem:[#allocation2 + $0xc0] sm:$0xff]  ;;  %v959_v32 = vmul.f32 %v1799_v62, %v920_v26  ;;  %887 = vst.msk [vmem:[#allocation2 + $0x50] sm:$0xff] %vm313_vm0, %v854_v18  ;;  %903 = vst.msk [vmem:[#allocation2 + $0xd0] sm:$0xff] %vm313_vm0, %v870_v19  ;;  %v762_v34 = vpop.f32.mrb[23].mxu0  ;;  %v826_v35 = vpop.f32.mrb[23].mxu1  ;;  %v855_v38 = vadd.f32 %v760_v28, %v357_v22 }
 0x12e   : > { %v1045_v17 = vmax.f32 %v1013_v11, 0.0  ;;  %v1471_v25 = vpack.c.bf16 %v1044_v13, %v1044_v13  ;;  %v975_v33 = vmul.f32 %v1799_v62, %v936_v27  ;;  %v871_v39 = vadd.f32 %v824_v29, %v373_v23  ;;  %v360_v18 = vld [vmem:[#allocation2 + $0x70] sm:$0xff]  ;;  %v361_v26 = vld [vmem:[#allocation2 + $0x78] sm:$0xff] }
 0x12f   : > { %v1456_v30 = vpack.c.bf16 %v1029_v16, %v1029_v16  ;;  %1189 = vst.msk [vmem:[%s1822_s28 + $0x18] sm:$0xf] %vm1182_vm2, %v1455_v24  ;;  %v998_v40 = vadd.f32 %v1804_v8, %v959_v32  ;;  %v376_v19 = vld [vmem:[#allocation2 + $0xf0] sm:$0xff]  ;;  %v377_v27 = vld [vmem:[#allocation2 + $0xf8] sm:$0xff] }
 0x130   : > { %v1472_v31 = vpack.c.bf16 %v1045_v17, %v1045_v17  ;;  %1205 = vst.msk [vmem:[%s1822_s28 + $0x58] sm:$0xf] %vm1182_vm2, %v1471_v25  ;;  %v921_v36 = vld [vmem:[#allocation2 + $0x48] sm:$0xff]  ;;  %v1014_v41 = vadd.f32 %v1804_v8, %v975_v33 }
 0x131   : > { %v937_v37 = vld [vmem:[#allocation2 + $0xc8] sm:$0xff]  ;;  %1190 = vst.msk [vmem:[%s1822_s28 + $0x1c] sm:$0xf] %vm1182_vm2, %v1456_v30  ;;  %v960_v42 = vmul.f32 %v1799_v62, %v921_v36  ;;  %v1030_v44 = vmax.f32 %v998_v40, 0.0 }
 0x132   : > { %1206 = vst.msk [vmem:[%s1822_s28 + $0x5c] sm:$0xf] %vm1182_vm2, %v1472_v31  ;;  %v976_v43 = vmul.f32 %v1799_v62, %v937_v37  ;;  %v1046_v45 = vmax.f32 %v1014_v41, 0.0  ;;  %v765_v50 = vpop.f32.mrb[24].mxu0  ;;  %v829_v51 = vpop.f32.mrb[24].mxu1 }
 0x133   : > { %888 = vst.msk [vmem:[#allocation2 + $0x58] sm:$0xff] %vm313_vm0, %v855_v38  ;;  %904 = vst.msk [vmem:[#allocation2 + $0xd8] sm:$0xff] %vm313_vm0, %v871_v39  ;;  %v999_v46 = vadd.f32 %v1804_v8, %v960_v42  ;;  %v1457_v52 = vpack.c.bf16 %v1030_v44, %v1030_v44  ;;  %v767_v56 = vpop.f32.mrb[25].mxu0  ;;  %v831_v57 = vpop.f32.mrb[25].mxu1  ;;  %v856_v63 = vadd.f32 %v765_v50, %v358_v48 }
 0x134   : > { %v1015_v47 = vadd.f32 %v1804_v8, %v976_v43  ;;  %v1473_v53 = vpack.c.bf16 %v1046_v45, %v1046_v45  ;;  %v922_v60 = vld [vmem:[#allocation2 + $0x50] sm:$0xff]  ;;  %v872_v0 = vadd.f32 %v829_v51, %v374_v49  ;;  %v768_v1 = vpop.f32.mrb[26].mxu0  ;;  %v832_v2 = vpop.f32.mrb[26].mxu1 }
 0x135   : > { %v1031_v54 = vmax.f32 %v999_v46, 0.0  ;;  %v938_v61 = vld [vmem:[#allocation2 + $0xd0] sm:$0xff]  ;;  %1191 = vst.msk [vmem:[%s1822_s28 + $0x20] sm:$0xf] %vm1182_vm2, %v1457_v52  ;;  %v961_v5 = vmul.f32 %v1799_v62, %v922_v60  ;;  %v770_v7 = vpop.f32.mrb[27].mxu0  ;;  %v834_v9 = vpop.f32.mrb[27].mxu1  ;;  %v857_v10 = vadd.f32 %v768_v1, %v359_v58  ;;  %v873_v11 = vadd.f32 %v832_v2, %v375_v59 }
 0x136   : > { %v1047_v55 = vmax.f32 %v1015_v47, 0.0  ;;  %1207 = vst.msk [vmem:[%s1822_s28 + $0x60] sm:$0xf] %vm1182_vm2, %v1473_v53  ;;  %v977_v6 = vmul.f32 %v1799_v62, %v938_v61 }
 0x137   : > { %v1458_v3 = vpack.c.bf16 %v1031_v54, %v1031_v54  ;;  %889 = vst.msk [vmem:[#allocation2 + $0x60] sm:$0xff] %vm313_vm0, %v856_v63  ;;  %905 = vst.msk [vmem:[#allocation2 + $0xe0] sm:$0xff] %vm313_vm0, %v872_v0  ;;  %v1000_v12 = vadd.f32 %v1804_v8, %v961_v5 }
 0x138   : > { %v1474_v4 = vpack.c.bf16 %v1047_v55, %v1047_v55  ;;  %v1016_v13 = vadd.f32 %v1804_v8, %v977_v6  ;;  %890 = vst.msk [vmem:[#allocation2 + $0x68] sm:$0xff] %vm313_vm0, %v857_v10  ;;  %906 = vst.msk [vmem:[#allocation2 + $0xe8] sm:$0xff] %vm313_vm0, %v873_v11 }
 0x139   : > { %1192 = vst.msk [vmem:[%s1822_s28 + $0x24] sm:$0xf] %vm1182_vm2, %v1458_v3  ;;  %v1032_v20 = vmax.f32 %v1000_v12, 0.0 }
 0x13a   : > { %1208 = vst.msk [vmem:[%s1822_s28 + $0x64] sm:$0xf] %vm1182_vm2, %v1474_v4  ;;  %v923_v14 = vld [vmem:[#allocation2 + $0x58] sm:$0xff]  ;;  %v1048_v21 = vmax.f32 %v1016_v13, 0.0  ;;  %v773_v24 = vpop.f32.mrb[28].mxu0  ;;  %v837_v25 = vpop.f32.mrb[28].mxu1 }
 0x13b   : > { %v939_v15 = vld [vmem:[#allocation2 + $0xd8] sm:$0xff]  ;;  %v962_v16 = vmul.f32 %v1799_v62, %v923_v14  ;;  %v1459_v28 = vpack.c.bf16 %v1032_v20, %v1032_v20  ;;  %v858_v30 = vadd.f32 %v773_v24, %v360_v18  ;;  %v874_v31 = vadd.f32 %v837_v25, %v376_v19  ;;  %v775_v32 = vpop.f32.mrb[29].mxu0  ;;  %v839_v33 = vpop.f32.mrb[29].mxu1 }
 0x13c   : > { %v978_v17 = vmul.f32 %v1799_v62, %v939_v15  ;;  %v1475_v29 = vpack.c.bf16 %v1048_v21, %v1048_v21  ;;  %v776_v36 = vpop.f32.mrb[30].mxu0  ;;  %v840_v37 = vpop.f32.mrb[30].mxu1 }
 0x13d   : > { %v1001_v22 = vadd.f32 %v1804_v8, %v962_v16  ;;  %1193 = vst.msk [vmem:[%s1822_s28 + $0x28] sm:$0xf] %vm1182_vm2, %v1459_v28  ;;  %v859_v40 = vadd.f32 %v776_v36, %v361_v26  ;;  %v875_v41 = vadd.f32 %v840_v37, %v377_v27  ;;  %v778_v42 = vpop.f32.mrb[31].mxu0  ;;  %v842_v43 = vpop.f32.mrb[31].mxu1 }
 0x13e   : > { %v1017_v23 = vadd.f32 %v1804_v8, %v978_v17  ;;  %1209 = vst.msk [vmem:[%s1822_s28 + $0x68] sm:$0xf] %vm1182_vm2, %v1475_v29  ;;  %v924_v38 = vld [vmem:[#allocation2 + $0x60] sm:$0xff] }
 0x13f   : > { %v1033_v34 = vmax.f32 %v1001_v22, 0.0  ;;  %v940_v39 = vld [vmem:[#allocation2 + $0xe0] sm:$0xff]  ;;  %891 = vst.msk [vmem:[#allocation2 + $0x70] sm:$0xff] %vm313_vm0, %v858_v30  ;;  %907 = vst.msk [vmem:[#allocation2 + $0xf0] sm:$0xff] %vm313_vm0, %v874_v31  ;;  %v963_v46 = vmul.f32 %v1799_v62, %v924_v38  ;;  %v925_v48 = vld [vmem:[#allocation2 + $0x68] sm:$0xff] }
 0x140   : > { %v1049_v35 = vmax.f32 %v1017_v23, 0.0  ;;  %v979_v47 = vmul.f32 %v1799_v62, %v940_v39  ;;  %v941_v49 = vld [vmem:[#allocation2 + $0xe8] sm:$0xff]  ;;  %892 = vst.msk [vmem:[#allocation2 + $0x78] sm:$0xff] %vm313_vm0, %v859_v40  ;;  %908 = vst.msk [vmem:[#allocation2 + $0xf8] sm:$0xff] %vm313_vm0, %v875_v41  ;;  %v964_v52 = vmul.f32 %v1799_v62, %v925_v48 }
 0x141   : > { %v1460_v44 = vpack.c.bf16 %v1033_v34, %v1033_v34  ;;  %v1002_v50 = vadd.f32 %v1804_v8, %v963_v46  ;;  %v980_v53 = vmul.f32 %v1799_v62, %v941_v49 }
 0x142   : > { %v1476_v45 = vpack.c.bf16 %v1049_v35, %v1049_v35  ;;  %v1018_v51 = vadd.f32 %v1804_v8, %v979_v47  ;;  %v1003_v56 = vadd.f32 %v1804_v8, %v964_v52 }
 0x143   : > { %1194 = vst.msk [vmem:[%s1822_s28 + $0x2c] sm:$0xf] %vm1182_vm2, %v1460_v44  ;;  %v1034_v54 = vmax.f32 %v1002_v50, 0.0  ;;  %v1019_v57 = vadd.f32 %v1804_v8, %v980_v53 }
 0x144   : > { %1210 = vst.msk [vmem:[%s1822_s28 + $0x6c] sm:$0xf] %vm1182_vm2, %v1476_v45  ;;  %v1050_v55 = vmax.f32 %v1018_v51, 0.0  ;;  %v1035_v60 = vmax.f32 %v1003_v56, 0.0 }
 0x145   : > { %v1461_v58 = vpack.c.bf16 %v1034_v54, %v1034_v54  ;;  %v1051_v61 = vmax.f32 %v1019_v57, 0.0 }
 0x146   : > { %v1477_v59 = vpack.c.bf16 %v1050_v55, %v1050_v55  ;;  %v926_v63 = vld [vmem:[#allocation2 + $0x70] sm:$0xff]  ;;  %v1462_v3 = vpack.c.bf16 %v1035_v60, %v1035_v60 }
 0x147   : > { %v942_v0 = vld [vmem:[#allocation2 + $0xf0] sm:$0xff]  ;;  %v965_v1 = vmul.f32 %v1799_v62, %v926_v63  ;;  %1195 = vst.msk [vmem:[%s1822_s28 + $0x30] sm:$0xf] %vm1182_vm2, %v1461_v58  ;;  %v1478_v4 = vpack.c.bf16 %v1051_v61, %v1051_v61  ;;  %v927_v5 = vld [vmem:[#allocation2 + $0x78] sm:$0xff] }
 0x148   : > { %v981_v2 = vmul.f32 %v1799_v62, %v942_v0  ;;  %1211 = vst.msk [vmem:[%s1822_s28 + $0x70] sm:$0xf] %vm1182_vm2, %v1477_v59  ;;  %v943_v6 = vld [vmem:[#allocation2 + $0xf8] sm:$0xff]  ;;  %v966_v10 = vmul.f32 %v1799_v62, %v927_v5  ;;  %1196 = vst.msk [vmem:[%s1822_s28 + $0x34] sm:$0xf] %vm1182_vm2, %v1462_v3 }
 0x149   : > { %v1004_v7 = vadd.f32 %v1804_v8, %v965_v1  ;;  %v982_v11 = vmul.f32 %v1799_v62, %v943_v6  ;;  %1212 = vst.msk [vmem:[%s1822_s28 + $0x74] sm:$0xf] %vm1182_vm2, %v1478_v4 }
 0x14a   : > { %v1020_v9 = vadd.f32 %v1804_v8, %v981_v2  ;;  %v1005_v14 = vadd.f32 %v1804_v8, %v966_v10 }
 0x14b   : > { %v1036_v12 = vmax.f32 %v1004_v7, 0.0  ;;  %v1021_v15 = vadd.f32 %v1804_v8, %v982_v11 }
 0x14c   : > { %v1052_v13 = vmax.f32 %v1020_v9, 0.0  ;;  %v1037_v18 = vmax.f32 %v1005_v14, 0.0 }
 0x14d   : > { %v1463_v16 = vpack.c.bf16 %v1036_v12, %v1036_v12  ;;  %v1053_v19 = vmax.f32 %v1021_v15, 0.0 }
 0x14e   : > { %v1479_v17 = vpack.c.bf16 %v1052_v13, %v1052_v13  ;;  %v1464_v62 = vpack.c.bf16 %v1037_v18, %v1037_v18 }
 0x14f   : > { %1197 = vst.msk [vmem:[%s1822_s28 + $0x38] sm:$0xf] %vm1182_vm2, %v1463_v16  ;;  %v1480_v20 = vpack.c.bf16 %v1053_v19, %v1053_v19 }
 0x150   : > { %1213 = vst.msk [vmem:[%s1822_s28 + $0x78] sm:$0xf] %vm1182_vm2, %v1479_v17  ;;  %1198 = vst.msk [vmem:[%s1822_s28 + $0x3c] sm:$0xf] %vm1182_vm2, %v1464_v62 }
 0x151   : > { %1214 = vst.msk [vmem:[%s1822_s28 + $0x7c] sm:$0xf] %vm1182_vm2, %v1480_v20 }
 0x152 PF: > { %s14_s17 = sadd.s32 1, %s1607_s17   ;;  %s1982_s15 = smov %s1603_s16 }
 0x153   : > { %p11_p5 = scmp.ge.s32.totalorder %s14_s17, 10   ;;  %s1983_s16 = smov %s1985_s18 }
 0x155   :  { %13 = sbr.rel (!%p11_p5) target bundleno = 2 (0x2), region = 83 }

</bundles_post_ra>
